<compile_context>
chip_gen: v7x
topology: tpu7x:2x2x1
jax: 0.10.0
libtpu: 0.0.40
codegen_flags: <defaults>
</compile_context>

<pallas_src>
import jax
import jax.numpy as jnp
from jax import lax
from jax.experimental import pallas as pl
from jax.experimental.pallas import tpu as pltpu


NEG_INF = float("-inf")
POS_INF = float("inf")


# --------------------------------------------------------------------------- #
# Stage 1: streaming per-split segment statistics (sum+count / max / min)
# --------------------------------------------------------------------------- #
def _segment_stats_kernel(g_lo_ref, g_hi_ref, x_ref, batch_ref,
                          psum_ref, pmax_ref, pmin_ref):
    t = pl.program_id(1)
    tile_idx = pl.program_id(0) * pl.num_programs(1) + t

    B = psum_ref.shape[0]
    TN = x_ref.shape[0]

    @pl.when(t == 0)
    def _init():
        psum_ref[...] = jnp.zeros_like(psum_ref)
        pmax_ref[...] = jnp.full_like(pmax_ref, NEG_INF)
        pmin_ref[...] = jnp.full_like(pmin_ref, POS_INF)

    x_ext = x_ref[...]          # [TN, F+1] f32 (last col == 1, 0 on pad rows)
    batch = batch_ref[...]      # [TN, 1] int32 (-1 on pad rows)

    # --- segment sums + counts: one MXU matmul, one-hot in natural layout ----
    iota_b = lax.broadcasted_iota(jnp.int32, (TN, B), 1)          # [TN, B]
    onehot = (batch == iota_b).astype(jnp.float32)                # [TN, B]
    # Contract the node axis of both operands (== onehot.T @ x_ext) — no
    # in-kernel transpose/relayout of batch or the one-hot.
    psum_ref[...] += lax.dot_general(
        onehot, x_ext, (((0,), (0,)), ((), ())),
        preferred_element_type=jnp.float32)                       # [B, F+1]

    # --- segment max / min: loop only over graphs present in this tile -------
    g_lo = g_lo_ref[tile_idx]
    g_hi = g_hi_ref[tile_idx]
    row_ids = lax.broadcasted_iota(jnp.int32, (B, 1), 0)          # hoisted

    def body(b, carry):
        m = batch == b                                            # [TN, 1]
        row_max = jnp.max(jnp.where(m, x_ext, NEG_INF), axis=0, keepdims=True)
        row_min = jnp.min(jnp.where(m, x_ext, POS_INF), axis=0, keepdims=True)
        sel = row_ids == b                                        # [B, 1]
        pmax_ref[...] = jnp.maximum(pmax_ref[...],
                                    jnp.where(sel, row_max, NEG_INF))
        pmin_ref[...] = jnp.minimum(pmin_ref[...],
                                    jnp.where(sel, row_min, POS_INF))
        return carry

    lax.fori_loop(g_lo, g_hi + 1, body, 0)


# --------------------------------------------------------------------------- #
# Stage 2: merge per-split partials, exact mean, 3-layer MLP (runs once)
# --------------------------------------------------------------------------- #
def _finalize_kernel(psum_ref, pmax_ref, pmin_ref, u_ref,
                     w1u_ref, w1mmm_ref, w2b2_ref, w3b3_ref, out_ref):
    s = jnp.sum(psum_ref[...], axis=0)                # [B, F+1]
    mx = jnp.max(pmax_ref[...], axis=0)               # [B, F+1]
    mn = jnp.min(pmin_ref[...], axis=0)               # [B, F+1]

    F = s.shape[1] - 1
    sums = s[:, :F]
    counts = s[:, F:]
    # Exact divide: this kernel runs once per call, so the EUP-approx
    # reciprocal buys nothing here.
    mean = sums / jnp.maximum(counts, 1.0)

    nonempty = counts > 0.5
    seg_max = jnp.where(nonempty, mx[:, :F], 0.0)
    seg_min = jnp.where(nonempty, mn[:, :F], 0.0)

    # First Linear split row-wise (no lane-misaligned concat); b1 is folded
    # into the u-slice of w1 via the ones column on u.
    h = jnp.dot(u_ref[...], w1u_ref[...], preferred_element_type=jnp.float32)
    h += jnp.dot(mean, w1mmm_ref[0], preferred_element_type=jnp.float32)
    h += jnp.dot(seg_max, w1mmm_ref[1], preferred_element_type=jnp.float32)
    h += jnp.dot(seg_min, w1mmm_ref[2], preferred_element_type=jnp.float32)
    h = jnp.maximum(h, 0.0)

    H = w2b2_ref.shape[1]
    h = jnp.dot(h, w2b2_ref[:H, :], preferred_element_type=jnp.float32)
    h = jnp.maximum(h + w2b2_ref[H:H + 1, :], 0.0)

    y = jnp.dot(h, w3b3_ref[:H, :], preferred_element_type=jnp.float32)
    out_ref[...] = y + w3b3_ref[H:H + 1, :]


# --------------------------------------------------------------------------- #
# Wrapper
# --------------------------------------------------------------------------- #
def global_model_forward(x, batch, u, params, *, node_tile=512, n_splits=2):
    """Pallas forward of GlobalModel.forward: (x, batch, u) -> [B, latent]."""
    N, F = x.shape
    B, U = u.shape
    H = params["w2"].shape[0]
    L = params["w3"].shape[1]

    def rup(v, m):
        return ((v + m - 1) // m) * m

    # Large node tiles by default (512 rows); clamp for tiny graphs so the
    # small-shape test does not pad to thousands of rows.
    node_tile = max(8, min(rup(node_tile, 8), rup(pl.cdiv(N, n_splits), 8)))
    tiles_per_split = pl.cdiv(N, n_splits * node_tile)
    n_total_tiles = n_splits * tiles_per_split
    n_pad_rows = n_total_tiles * node_tile - N

    # Node features with an appended ones column (counts ride the sum matmul);
    # pad rows get batch id -1 (matches no graph).
    x_ext = jnp.concatenate(
        [x.astype(jnp.float32), jnp.ones((N, 1), jnp.float32)], axis=1)
    batch_col = batch.reshape(-1, 1).astype(jnp.int32)
    if n_pad_rows:
        x_ext = jnp.concatenate(
            [x_ext, jnp.zeros((n_pad_rows, F + 1), jnp.float32)], axis=0)
        batch_col = jnp.concatenate(
            [batch_col, jnp.full((n_pad_rows, 1), -1, jnp.int32)], axis=0)

    # Per-tile graph-id ranges (scalar-prefetched into SMEM): with a sorted
    # batch vector a tile spans only a few graphs, bounding the in-kernel
    # max/min loop by graphs-per-tile instead of B.
    bt = batch_col[:, 0].reshape(n_total_tiles, node_tile)
    valid = bt >= 0
    g_lo = jnp.min(jnp.where(valid, bt, B), axis=1).astype(jnp.int32)
    g_hi = jnp.max(jnp.where(valid, bt, -1), axis=1).astype(jnp.int32)

    # ---- stage 1: streaming per-split segment stats -------------------------
    stat_shape = jax.ShapeDtypeStruct((n_splits, B, F + 1), jnp.float32)
    node_map = lambda s, t, lo, hi: (s * tiles_per_split + t, 0)
    stat_map = lambda s, t, lo, hi: (s, 0, 0)

    grid_spec = pltpu.PrefetchScalarGridSpec(
        num_scalar_prefetch=2,
        grid=(n_splits, tiles_per_split),
        in_specs=[
            pl.BlockSpec((node_tile, F + 1), node_map),   # x tile
            pl.BlockSpec((node_tile, 1), node_map),       # batch tile
        ],
        out_specs=[
            pl.BlockSpec((None, B, F + 1), stat_map),     # partial sums+counts
            pl.BlockSpec((None, B, F + 1), stat_map),     # partial max
            pl.BlockSpec((None, B, F + 1), stat_map),     # partial min
        ],
    )
    psum, pmax, pmin = pl.pallas_call(
        _segment_stats_kernel,
        out_shape=(stat_shape, stat_shape, stat_shape),
        grid_spec=grid_spec,
        compiler_params=pltpu.CompilerParams(
            # Split axis is independent (feeds both TensorCores on v7x, no-op
            # cost on single-TC chips); node-tile axis is the reduction.
            dimension_semantics=("parallel", "arbitrary")),
    )(g_lo, g_hi, x_ext, batch_col)

    # ---- stage 2: merge partials + exact mean + 3-layer MLP ------------------
    # Weight packing (done once per call, outside the kernels):
    #   u gets a ones column so b1 folds into the u-slice of w1,
    #   w1 is split row-wise into [u | mean | max | min] chunks,
    #   b2 / b3 become an extra row of w2 / w3.
    u_ext = jnp.concatenate(
        [u.astype(jnp.float32), jnp.ones((B, 1), jnp.float32)], axis=1)
    w1 = params["w1"].astype(jnp.float32)
    w1u = jnp.concatenate(
        [w1[:U], params["b1"].reshape(1, H).astype(jnp.float32)], axis=0)
    w1mmm = jnp.stack(
        [w1[U:U + F], w1[U + F:U + 2 * F], w1[U + 2 * F:U + 3 * F]], axis=0)
    w2b2 = jnp.concatenate(
        [params["w2"].astype(jnp.float32),
         params["b2"].reshape(1, H).astype(jnp.float32)], axis=0)
    w3b3 = jnp.concatenate(
        [params["w3"].astype(jnp.float32),
         params["b3"].reshape(1, L).astype(jnp.float32)], axis=0)

    def whole(a):
        nd = a.ndim
        return pl.BlockSpec(a.shape, lambda i, _nd=nd: (0,) * _nd)

    return pl.pallas_call(
        _finalize_kernel,
        out_shape=jax.ShapeDtypeStruct((B, L), jnp.float32),
        grid=(1,),
        in_specs=[whole(psum), whole(pmax), whole(pmin), whole(u_ext),
                  whole(w1u), whole(w1mmm), whole(w2b2), whole(w3b3)],
        out_specs=pl.BlockSpec((B, L), lambda i: (0, 0)),
    )(psum, pmax, pmin, u_ext, w1u, w1mmm, w2b2, w3b3)


# --------------------------------------------------------------------------- #
# Pure-JAX reference (matches the PyTorch forward semantics)
# --------------------------------------------------------------------------- #
def _reference(x, batch, u, params):
    B = u.shape[0]
    onehot = (jnp.arange(B)[:, None] == batch[None, :]).astype(jnp.float32)
    counts = onehot.sum(axis=1, keepdims=True)
    sums = onehot @ x
    mean = sums / jnp.maximum(counts, 1.0)
    mask = onehot[:, :, None] > 0.5
    xb = jnp.broadcast_to(x[None], (B,) + x.shape)
    mx = jnp.max(jnp.where(mask, xb, -jnp.inf), axis=1)
    mn = jnp.min(jnp.where(mask, xb, jnp.inf), axis=1)
    nonempty = counts > 0.5
    mx = jnp.where(nonempty, mx, 0.0)
    mn = jnp.where(nonempty, mn, 0.0)
    feat = jnp.concatenate([u, mean, mx, mn], axis=1)
    h = jnp.maximum(feat @ params["w1"] + params["b1"], 0.0)
    h = jnp.maximum(h @ params["w2"] + params["b2"], 0.0)
    return h @ params["w3"] + params["b3"]


if __name__ == "__main__":
    # Small shapes consistent with the module's __init__:
    in_channels, hidden_channels, latent_channels = 4, 32, 4
    F = in_channels + latent_channels * 3 + 2            # node feature width = 18
    mlp_in = F * 3 + 2                                    # = 56
    N, B = 16, 2                                          # 16 nodes, 2 graphs

    key = jax.random.PRNGKey(0)
    kx, ku, k1, k2, k3, kb1, kb2, kb3 = jax.random.split(key, 8)

    x = jax.random.normal(kx, (N, F), dtype=jnp.float32)
    u = jax.random.normal(ku, (B, 2), dtype=jnp.float32)
    batch = jnp.concatenate([jnp.zeros(N // 2, jnp.int32),
                             jnp.ones(N - N // 2, jnp.int32)])

    params = {
        "w1": 0.1 * jax.random.normal(k1, (mlp_in, hidden_channels), jnp.float32),
        "b1": 0.1 * jax.random.normal(kb1, (1, hidden_channels), jnp.float32),
        "w2": 0.1 * jax.random.normal(k2, (hidden_channels, hidden_channels), jnp.float32),
        "b2": 0.1 * jax.random.normal(kb2, (1, hidden_channels), jnp.float32),
        "w3": 0.1 * jax.random.normal(k3, (hidden_channels, latent_channels), jnp.float32),
        "b3": 0.1 * jax.random.normal(kb3, (1, latent_channels), jnp.float32),
    }

    out = global_model_forward(x, batch, u, params)
    out = jax.block_until_ready(out)

    ref = _reference(x, batch, u, params)
    assert out.shape == (B, latent_channels)
    assert jnp.allclose(out, ref, atol=1e-4, rtol=1e-4), "mismatch vs reference"

    print("KERNEL_OK")
</pallas_src>

<mosaic_0001>
module attributes {stable_mosaic.version = 11 : i64} {
  func.func @_segment_stats_kernel(%arg0: i32, %arg1: i32, %arg2: memref<2xi32, #tpu.memory_space<smem>>, %arg3: memref<2xi32, #tpu.memory_space<smem>>, %arg4: memref<8x19xf32, #tpu.memory_space<vmem>>, %arg5: memref<8x1xi32, #tpu.memory_space<vmem>>, %arg6: memref<1x2x19xf32, #tpu.memory_space<vmem>>, %arg7: memref<1x2x19xf32, #tpu.memory_space<vmem>>, %arg8: memref<1x2x19xf32, #tpu.memory_space<vmem>>) attributes {dimension_semantics = [#tpu.dimension_semantics<parallel>, #tpu.dimension_semantics<arbitrary>], iteration_bounds = array<i64: 2, 1>, scalar_prefetch = 2 : i64, scratch_operands = 0 : i64, tpu.core_type = #tpu.core_type<tc>, window_params = [{transform_indices = @transform_0, window_bounds = array<i64: 8, 19>}, {transform_indices = @transform_1, window_bounds = array<i64: 8, 1>}, {transform_indices = @transform_2, window_bounds = array<i64: 1, 2, 19>}, {transform_indices = @transform_3, window_bounds = array<i64: 1, 2, 19>}, {transform_indices = @transform_4, window_bounds = array<i64: 1, 2, 19>}]} {
    %c1_i32 = arith.constant 1 : i32
    %0 = arith.muli %arg0, %c1_i32 : i32
    %1 = arith.addi %0, %arg1 : i32
    %c0_i32 = arith.constant 0 : i32
    %2 = arith.cmpi eq, %arg1, %c0_i32 : i32
    %3 = arith.extui %2 : i1 to i32
    %c0_i32_0 = arith.constant 0 : i32
    %4 = arith.cmpi ne, %3, %c0_i32_0 : i32
    scf.if %4 {
      %cst_13 = arith.constant 0.000000e+00 : f32
      %27 = vector.broadcast %cst_13 : f32 to vector<2x19xf32>
      %c0_14 = arith.constant 0 : index
      %c0_15 = arith.constant 0 : index
      %c0_16 = arith.constant 0 : index
      %28 = vector.load %arg6[%c0_14, %c0_15, %c0_16] : memref<1x2x19xf32, #tpu.memory_space<vmem>>, vector<1x2x19xf32>
      %29 = vector.shape_cast %28 : vector<1x2x19xf32> to vector<2x19xf32>
      %30 = vector.shape_cast %27 : vector<2x19xf32> to vector<1x2x19xf32>
      tpu.vector_store %arg6[%c0_14, %c0_15, %c0_16], %30 {strides = array<i32>} : memref<1x2x19xf32, #tpu.memory_space<vmem>>, vector<1x2x19xf32>,
      %cst_17 = arith.constant 0xFF800000 : f32
      %31 = vector.broadcast %cst_17 : f32 to vector<2x19xf32>
      %c0_18 = arith.constant 0 : index
      %c0_19 = arith.constant 0 : index
      %c0_20 = arith.constant 0 : index
      %32 = vector.load %arg7[%c0_18, %c0_19, %c0_20] : memref<1x2x19xf32, #tpu.memory_space<vmem>>, vector<1x2x19xf32>
      %33 = vector.shape_cast %32 : vector<1x2x19xf32> to vector<2x19xf32>
      %34 = vector.shape_cast %31 : vector<2x19xf32> to vector<1x2x19xf32>
      tpu.vector_store %arg7[%c0_18, %c0_19, %c0_20], %34 {strides = array<i32>} : memref<1x2x19xf32, #tpu.memory_space<vmem>>, vector<1x2x19xf32>,
      %cst_21 = arith.constant 0x7F800000 : f32
      %35 = vector.broadcast %cst_21 : f32 to vector<2x19xf32>
      %c0_22 = arith.constant 0 : index
      %c0_23 = arith.constant 0 : index
      %c0_24 = arith.constant 0 : index
      %36 = vector.load %arg8[%c0_22, %c0_23, %c0_24] : memref<1x2x19xf32, #tpu.memory_space<vmem>>, vector<1x2x19xf32>
      %37 = vector.shape_cast %36 : vector<1x2x19xf32> to vector<2x19xf32>
      %38 = vector.shape_cast %35 : vector<2x19xf32> to vector<1x2x19xf32>
      tpu.vector_store %arg8[%c0_22, %c0_23, %c0_24], %38 {strides = array<i32>} : memref<1x2x19xf32, #tpu.memory_space<vmem>>, vector<1x2x19xf32>,
    } else {
    }
    %c0 = arith.constant 0 : index
    %c0_1 = arith.constant 0 : index
    %5 = vector.load %arg4[%c0, %c0_1] : memref<8x19xf32, #tpu.memory_space<vmem>>, vector<8x19xf32>
    %c0_2 = arith.constant 0 : index
    %c0_3 = arith.constant 0 : index
    %6 = vector.load %arg5[%c0_2, %c0_3] : memref<8x1xi32, #tpu.memory_space<vmem>>, vector<8x1xi32>
    %7 = tpu.iota {dimensions = array<i32: 1>} : vector<8x2xi32>
    %8 = vector.broadcast %6 : vector<8x1xi32> to vector<8x2xi32>
    %9 = arith.cmpi eq, %8, %7 : vector<8x2xi32>
    %10 = arith.extui %9 : vector<8x2xi1> to vector<8x2xi32>
    %11 = arith.sitofp %10 : vector<8x2xi32> to vector<8x2xf32>
    %c0_4 = arith.constant 0 : index
    %c0_5 = arith.constant 0 : index
    %c0_6 = arith.constant 0 : index
    %12 = vector.load %arg6[%c0_4, %c0_5, %c0_6] : memref<1x2x19xf32, #tpu.memory_space<vmem>>, vector<1x2x19xf32>
    %13 = vector.shape_cast %12 : vector<1x2x19xf32> to vector<2x19xf32>
    %cst = arith.constant dense<0.000000e+00> : vector<2x19xf32>
    %14 = tpu.matmul %11, %5, %cst {dimension_numbers = #tpu.dot_dimension_numbers<[0], [0], [1], [1], [0, 1, 1, 1], [], []>} : vector<8x2xf32>, vector<8x19xf32>, vector<2x19xf32> -> vector<2x19xf32>
    %15 = arith.addf %13, %14 : vector<2x19xf32>
    %c0_7 = arith.constant 0 : index
    %c0_8 = arith.constant 0 : index
    %c0_9 = arith.constant 0 : index
    %16 = vector.load %arg6[%c0_7, %c0_8, %c0_9] : memref<1x2x19xf32, #tpu.memory_space<vmem>>, vector<1x2x19xf32>
    %17 = vector.shape_cast %16 : vector<1x2x19xf32> to vector<2x19xf32>
    %18 = vector.shape_cast %15 : vector<2x19xf32> to vector<1x2x19xf32>
    tpu.vector_store %arg6[%c0_7, %c0_8, %c0_9], %18 {strides = array<i32>} : memref<1x2x19xf32, #tpu.memory_space<vmem>>, vector<1x2x19xf32>,
    %19 = arith.index_cast %1 : i32 to index
    %20 = memref.load %arg2[%19] : memref<2xi32, #tpu.memory_space<smem>>
    %21 = arith.index_cast %1 : i32 to index
    %22 = memref.load %arg3[%21] : memref<2xi32, #tpu.memory_space<smem>>
    %23 = tpu.iota {dimensions = array<i32: 0>} : vector<2x1xi32>
    %c1_i32_10 = arith.constant 1 : i32
    %24 = arith.addi %22, %c1_i32_10 : i32
    %c0_i32_11 = arith.constant 0 : i32
    %25 = arith.subi %24, %20 : i32
    %26 = arith.addi %20, %25 : i32
    %c1_i32_12 = arith.constant 1 : i32
    scf.for %arg9 = %20 to %26 step %c1_i32_12  : i32 {
      %27 = vector.broadcast %arg9 : i32 to vector<8x1xi32>
      %28 = arith.cmpi eq, %6, %27 : vector<8x1xi32>
      %cst_13 = arith.constant 0xFF800000 : f32
      %29 = vector.shape_cast %28 : vector<8x1xi1> to vector<8x1xi1>
      %30 = vector.broadcast %29 : vector<8x1xi1> to vector<8x19xi1>
      %31 = vector.broadcast %cst_13 : f32 to vector<8x19xf32>
      %32 = arith.select %30, %5, %31 : vector<8x19xi1>, vector<8x19xf32>
      %cst_14 = arith.constant dense<0xFF800000> : vector<19xf32>
      %33 = vector.multi_reduction <maximumf>, %32, %cst_14 [0] : vector<8x19xf32> to vector<19xf32>
      %34 = vector.shape_cast %33 : vector<19xf32> to vector<1x19xf32>
      %cst_15 = arith.constant 0x7F800000 : f32
      %35 = vector.shape_cast %28 : vector<8x1xi1> to vector<8x1xi1>
      %36 = vector.broadcast %35 : vector<8x1xi1> to vector<8x19xi1>
      %37 = vector.broadcast %cst_15 : f32 to vector<8x19xf32>
      %38 = arith.select %36, %5, %37 : vector<8x19xi1>, vector<8x19xf32>
      %cst_16 = arith.constant dense<0x7F800000> : vector<19xf32>
      %39 = vector.multi_reduction <minimumf>, %38, %cst_16 [0] : vector<8x19xf32> to vector<19xf32>
      %40 = vector.shape_cast %39 : vector<19xf32> to vector<1x19xf32>
      %41 = vector.broadcast %arg9 : i32 to vector<2x1xi32>
      %42 = arith.cmpi eq, %23, %41 : vector<2x1xi32>
      %c0_17 = arith.constant 0 : index
      %c0_18 = arith.constant 0 : index
      %c0_19 = arith.constant 0 : index
      %43 = vector.load %arg7[%c0_17, %c0_18, %c0_19] : memref<1x2x19xf32, #tpu.memory_space<vmem>>, vector<1x2x19xf32>
      %44 = vector.shape_cast %43 : vector<1x2x19xf32> to vector<2x19xf32>
      %cst_20 = arith.constant 0xFF800000 : f32
      %45 = vector.shape_cast %42 : vector<2x1xi1> to vector<2x1xi1>
      %46 = vector.broadcast %45 : vector<2x1xi1> to vector<2x19xi1>
      %47 = vector.shape_cast %34 : vector<1x19xf32> to vector<1x19xf32>
      %48 = vector.broadcast %47 : vector<1x19xf32> to vector<2x19xf32>
      %49 = vector.broadcast %cst_20 : f32 to vector<2x19xf32>
      %50 = arith.select %46, %48, %49 : vector<2x19xi1>, vector<2x19xf32>
      %51 = arith.maximumf %44, %50 : vector<2x19xf32>
      %c0_21 = arith.constant 0 : index
      %c0_22 = arith.constant 0 : index
      %c0_23 = arith.constant 0 : index
      %52 = vector.load %arg7[%c0_21, %c0_22, %c0_23] : memref<1x2x19xf32, #tpu.memory_space<vmem>>, vector<1x2x19xf32>
      %53 = vector.shape_cast %52 : vector<1x2x19xf32> to vector<2x19xf32>
      %54 = vector.shape_cast %51 : vector<2x19xf32> to vector<1x2x19xf32>
      tpu.vector_store %arg7[%c0_21, %c0_22, %c0_23], %54 {strides = array<i32>} : memref<1x2x19xf32, #tpu.memory_space<vmem>>, vector<1x2x19xf32>,
      %c0_24 = arith.constant 0 : index
      %c0_25 = arith.constant 0 : index
      %c0_26 = arith.constant 0 : index
      %55 = vector.load %arg8[%c0_24, %c0_25, %c0_26] : memref<1x2x19xf32, #tpu.memory_space<vmem>>, vector<1x2x19xf32>
      %56 = vector.shape_cast %55 : vector<1x2x19xf32> to vector<2x19xf32>
      %cst_27 = arith.constant 0x7F800000 : f32
      %57 = vector.shape_cast %42 : vector<2x1xi1> to vector<2x1xi1>
      %58 = vector.broadcast %57 : vector<2x1xi1> to vector<2x19xi1>
      %59 = vector.shape_cast %40 : vector<1x19xf32> to vector<1x19xf32>
      %60 = vector.broadcast %59 : vector<1x19xf32> to vector<2x19xf32>
      %61 = vector.broadcast %cst_27 : f32 to vector<2x19xf32>
      %62 = arith.select %58, %60, %61 : vector<2x19xi1>, vector<2x19xf32>
      %63 = arith.minimumf %56, %62 : vector<2x19xf32>
      %c0_28 = arith.constant 0 : index
      %c0_29 = arith.constant 0 : index
      %c0_30 = arith.constant 0 : index
      %64 = vector.load %arg8[%c0_28, %c0_29, %c0_30] : memref<1x2x19xf32, #tpu.memory_space<vmem>>, vector<1x2x19xf32>
      %65 = vector.shape_cast %64 : vector<1x2x19xf32> to vector<2x19xf32>
      %66 = vector.shape_cast %63 : vector<2x19xf32> to vector<1x2x19xf32>
      tpu.vector_store %arg8[%c0_28, %c0_29, %c0_30], %66 {strides = array<i32>} : memref<1x2x19xf32, #tpu.memory_space<vmem>>, vector<1x2x19xf32>,
    }
    return
  }
  func.func @transform_0(%arg0: i32, %arg1: i32, %arg2: memref<2xi32, #tpu.memory_space<smem>>, %arg3: memref<2xi32, #tpu.memory_space<smem>>) -> (i32, i32) {
    %c1_i32 = arith.constant 1 : i32
    %0 = arith.muli %arg0, %c1_i32 : i32
    %1 = arith.addi %0, %arg1 : i32
    %c0_i32 = arith.constant 0 : i32
    %c0_i32_0 = arith.constant 0 : i32
    return %1, %c0_i32 : i32, i32
  }
  func.func @transform_1(%arg0: i32, %arg1: i32, %arg2: memref<2xi32, #tpu.memory_space<smem>>, %arg3: memref<2xi32, #tpu.memory_space<smem>>) -> (i32, i32) {
    %c1_i32 = arith.constant 1 : i32
    %0 = arith.muli %arg0, %c1_i32 : i32
    %1 = arith.addi %0, %arg1 : i32
    %c0_i32 = arith.constant 0 : i32
    %c0_i32_0 = arith.constant 0 : i32
    return %1, %c0_i32 : i32, i32
  }
  func.func @transform_2(%arg0: i32, %arg1: i32, %arg2: memref<2xi32, #tpu.memory_space<smem>>, %arg3: memref<2xi32, #tpu.memory_space<smem>>) -> (i32, i32, i32) {
    %c0_i32 = arith.constant 0 : i32
    %c0_i32_0 = arith.constant 0 : i32
    %c0_i32_1 = arith.constant 0 : i32
    return %arg0, %c0_i32, %c0_i32_0 : i32, i32, i32
  }
  func.func @transform_3(%arg0: i32, %arg1: i32, %arg2: memref<2xi32, #tpu.memory_space<smem>>, %arg3: memref<2xi32, #tpu.memory_space<smem>>) -> (i32, i32, i32) {
    %c0_i32 = arith.constant 0 : i32
    %c0_i32_0 = arith.constant 0 : i32
    %c0_i32_1 = arith.constant 0 : i32
    return %arg0, %c0_i32, %c0_i32_0 : i32, i32, i32
  }
  func.func @transform_4(%arg0: i32, %arg1: i32, %arg2: memref<2xi32, #tpu.memory_space<smem>>, %arg3: memref<2xi32, #tpu.memory_space<smem>>) -> (i32, i32, i32) {
    %c0_i32 = arith.constant 0 : i32
    %c0_i32_0 = arith.constant 0 : i32
    %c0_i32_1 = arith.constant 0 : i32
    return %arg0, %c0_i32, %c0_i32_0 : i32, i32, i32
  }
}

</mosaic_0001>

<bundles_post_ra>
// kernel: tpu_custom_call.1
= control target key start
LH: loop header
LB: loop body
LE: loop exit
PB: predicated region body
PF: predicated region fallthrough
CT: control target
= control target key end

     0   :  { %s1217_s0 = inlined_call_operand.vmem [shape: s32[2], index: 0, kind: input, shape index: {}]   ;;  %s1218_s2 = inlined_call_operand.vmem [shape: f32[16,19], index: 2, kind: input, shape index: {}]   ;;  %s1219_s3 = inlined_call_operand.vmem [shape: s32[16,1], index: 3, kind: input, shape index: {}]   ;;  %s1220_s4 = inlined_call_operand.hbm [shape: f32[2,2,19], index: 4, kind: output, shape index: {0}]   ;;  %s1221_s5 = inlined_call_operand.hbm [shape: f32[2,2,19], index: 5, kind: output, shape index: {1}]   ;;  %s1222_s6 = inlined_call_operand.hbm [shape: f32[2,2,19], index: 6, kind: output, shape index: {2}]   ;;  %s1223_s1 = inlined_call_operand.vmem [shape: s32[2], index: 1, kind: input, shape index: {}]  }
   0x1   :  { %s12_s23 = sshll.u32 %s1217_s0, 4  ;;  %s16_s26 = sshll.u32 %s1223_s1, 4  ;;  %s13_s23 = int_to_ptr.vmem [resolvable:$true] %s12_s23  ;;  %s17_s26 = int_to_ptr.vmem [resolvable:$true] %s16_s26 }
   0x2   :  { %s746_s27 = scalar_lea.vmem %s13_s23, 16  ;;  %p751_p1 = scmp.lt.s32.totalorder %s13_s23, %s13_s23 }
   0x3   :  { %p747_p0 = scmp.ne.s32.totalorder %s13_s23, %s746_s27  ;;  %p752_p2 = scmp.lt.s32.totalorder %s746_s27, %s746_s27 }
   0x5   :  { %p753_p3 = por %p752_p2, %p751_p1 }
   0x7   :  { %p754_p4 = pnand %p753_p3, %p747_p0 }
   0x9   :  { %757 = shalt.err (!%p754_p4)  }
   0xa   :  { %s920_s28 = smov [#allocation3]   ;;  %s758_s29 = scalar_lea.vmem %s17_s26, 16 }
   0xb   :  { %15 = dma.vmem_to_smem %s13_s23, 16, %s920_s28, [#allocation2] }
   0xc   :  { %p759_p5 = scmp.ne.s32.totalorder %s17_s26, %s758_s29  ;;  %p763_p6 = scmp.lt.s32.totalorder %s17_s26, %s17_s26 }
   0xd   :  { %p764_p7 = scmp.lt.s32.totalorder %s758_s29, %s758_s29 }
   0xf   :  { %p765_p8 = por %p764_p7, %p763_p6 }
  0x11   :  { %p766_p9 = pnand %p765_p8, %p759_p5 }
  0x13   :  { %769 = shalt.err (!%p766_p9)  }
  0x14   :  { %s921_s0 = smov [#allocation4]  }
  0x15   :  { %19 = dma.vmem_to_smem %s17_s26, 16, %s921_s0, [#allocation2] }
  0x16   :  { %882 = dma.done.wait [#allocation2], 32 }
  0x17   :  { %883 = vsyncadd [#allocation2], 4294967264 }
  0x18   :  { %21 = sfence }
  0x19   :  { %22 = vsyncpa [#allocation6], 0 }
  0x1a   :  { %24 = vsyncpa [#allocation6 + $0x1], 0 }
  0x1b   :  { %25 = vsyncpa [#allocation8], 0 }
  0x1c   :  { %27 = vsyncpa [#allocation8 + $0x1], 0  ;;  %s972_s1 = smov 0   ;;  %s974_s30 = smov 0  }
  0x1d   :  { %s976_s7 = smov 0   ;;  %s978_s8 = smov 0  }
  0x1e   :  { %s980_s9 = smov 0   ;;  %s982_s10 = smov 0  }
  0x1f LB: > { %s636_s11 = sadd.s32 4294967295, %s914_s10   ;;  %s1224_s12 = sadd.s32 4294967294, %s914_s10   ;;  %s914_s10 = sphi %s982_s10, %s33_s10   ;;  %s910_s9 = sphi %s980_s9, %s1232_s9   ;;  %s906_s8 = sphi %s978_s8, %s1231_s8   ;;  %s902_s7 = sphi %s976_s7, %s1230_s7   ;;  %s898_s30 = sphi %s974_s30, %s1229_s30   ;;  %s894_s1 = sphi %s972_s1, %s1228_s1  }
  0x20   : > { %s45_s13 = sadd.s32 1, %s910_s9  ;;  %s108_s14 = sadd.s32 1, %s902_s7 }
  0x21   : > { %p47_p10 = scmp.ge.s32.totalorder %s45_s13, 2  ;;  %p118_p11 = scmp.ne.s32.totalorder %s902_s7, %s898_s30 }
  0x22   : > { %p119_p12 = scmp.eq.s32.totalorder %s636_s11, 1  ;;  %p124_p13 = scmp.ne.s32.totalorder %s898_s30, %s894_s1 }
  0x23   : > { %s1234_s13 = smov (%p47_p10, %s45_s13), 0  ;;  %p125_p1 = scmp.eq.s32.totalorder %s1224_s12, 1 }
  0x24   : > { %p1014_p0 = por %p119_p12, %p118_p11  ;;  %s105_s16 = ssub.s32 %s910_s9, %s1234_s13 }
  0x25   : > { %p640_p2 = scmp.ge.s32.totalorder %s914_s10, 1  ;;  %p106_p3 = scmp.eq.s32.totalorder %s105_s16, 0 }
  0x26   : > { %p1023_p4 = por %p125_p1, %p124_p13  ;;  %p213_p5 = scmp.lt.s32.totalorder %s914_s10, 3 }
  0x27   : > { %s1029_s18 = scalar_select %p106_p3, %s902_s7, %s108_s14  }
  0x28   : > { %p214_p6 = pnand %p640_p2, %p213_p5 }
  0x29   : > { %p255_p7 = scmp.lt.s32.totalorder (!%p214_p6), %s906_s8, 1  ;;  %v277_v0 = vlaneseq (!%p214_p6)  ;;  %v922_v1 = vmov (!%p214_p6), 0   ;;  %v923_v2 = vmov (!%p214_p6), 0.0   ;;  %vm924_vm0 = vmmov (!%p214_p6), 0   ;;  %s237_s27 = sand.u32 (!%p214_p6), 1, %s898_s30  }
  0x2a   : > { %217 = sbr.rel (%p214_p6) target bundleno = 749 (0x2ed), region = 28  ;;  %744 = vset.pattern.permute.xlu0 (!%p214_p6), %v922_v1  ;;  %658 = vmatprep.subr.mxu0 (!%p214_p6), %v923_v2  ;;  %vm271_vm2 = vcmask (!%p214_p6), 148480   ;;  %s641_s28 = sshll.u32 (!%p214_p6), %s237_s27, 1  ;;  %v925_v9 = vmov (!%p214_p6), -inf   ;;  %v926_v10 = vmov (!%p214_p6), inf   ;;  %vm318_vm3 = vcmask (!%p214_p6), 64512  }
  0x2b   : > { %v1033_v3 = vshrl.u32 (!%p214_p6), %v277_v0, 7  ;;  %660 = vmatprep.mubr.msk.f32.mxu0 (!%p214_p6), %vm924_vm0, %v923_v2  ;;  %v278_v5 = vand.u32 (!%p214_p6), 127, %v277_v0  ;;  %s1050_s29 = scalar_lea.vmem (!%p214_p6), [#allocation5], %s641_s28  ;;  %s1054_s0 = scalar_lea.vmem (!%p214_p6), [#allocation7], %s641_s28 }
  0x2c   : > { %272 = vst.msk [vmem:[%s1050_s29] sm:$0x3] (!%p214_p6), %vm271_vm2, %v923_v2  ;;  %273 = vst.msk [vmem:[%s1054_s0] sm:$0x3] (!%p214_p6), %vm271_vm2, %v925_v9  ;;  %s1058_s14 = scalar_lea.vmem (!%p214_p6), [#allocation9], %s641_s28  ;;  %s1063_s16 = sld [smem:[#allocation4 + %s906_s8]] (!%p214_p6) }
  0x2d   : > { %274 = vst.msk [vmem:[%s1058_s14] sm:$0x3] (!%p214_p6), %vm271_vm2, %v926_v10 }
  0x31   : > { %s256_s19 = scalar_select %p255_p7, %s906_s8, 1 }
  0x33   : > { %s644_s20 = sshll.u32 %s256_s19, 3  ;;  %s395_s19 = sld [smem:[#allocation3 + %s906_s8]]   ;;  %v285_v12 = vld [vmem:[%s1050_s29] sm:$0x3] }
  0x34   : > { %s264_s23 = scalar_lea.vmem %s1219_s3, %s644_s20  ;;  %s258_s26 = scalar_lea.vmem %s1218_s2, %s644_s20 }
  0x35   : > { %v1038_v4 = vld [vmem:[%s264_s23] sm:$0xff]  ;;  %s399_s20 = sadd.s32 1, %s1063_s16 }
  0x36   : > { %280 = vperm.xlu0 %744, %v1038_v4   ;;  %v1044_v8 = vld [vmem:[%s258_s26] sm:$0xff] }
  0x37   : > { %659 = vmatpush3.msra.mxu0 %v1044_v8 }
  0x39   : > { %p579_p8 = scmp.ge.s32.totalorder %s395_s19, %s399_s20 }
  0xb5   : > { %v281_v6 = vpop.permute.xlu0 %280 }
  0xb6   : > { %vm282_vm1 = vcmp.eq.s32.totalorder %v281_v6, %v278_v5 }
  0xb7   : > { %v646_v7 = vsel %vm282_vm1, 1.0, %v923_v2 }
  0xb8   : > { %286 = vxpose.xlu0.b32.start.end [1/1] (short) (narrow) %v646_v7, 8 }
 0x138   : > { %v302_v11 = vpop.trf.xlu0 }
 0x139   : > { %661 = vmatmul.mubr.msk.f32.vlgmr.msra.gmra.mrb[0].mxu0 %vm318_vm3, %v302_v11 }
 0x209   : > { %580 = sbr.rel (%p579_p8) target bundleno = 678 (0x2a6), region = 103 }
 0x20c   : > { %v388_v13 = vpop.f32.mrb[0].mxu0 }
 0x20d   : > { %v392_v14 = vadd.f32 %v388_v13, %v285_v12  ;;  %v662_v15 = vpop.f32.mrb[1].mxu0 }
 0x20f   : > { %394 = vst.msk [vmem:[%s1050_s29] sm:$0x3] %vm271_vm2, %v392_v14 }
 0x210 LB: >> { %v927_v16 = vmov 0   ;;  %v406_v17 = vstv %s918_s19  ;;  %vm414_vm5 = vcmask 154624   ;;  %v431_v34 = vld [vmem:[%s1054_s0] sm:$0x3]  ;;  %v437_v35 = vld [vmem:[%s1058_s14] sm:$0x3]  ;;  %s918_s19 = sphi %s395_s19, %s403_s19  }
 0x211   : >> { %745 = vset.pattern.permute.xlu0 %v927_v16  ;;  %vm407_vm4 = vcmp.eq.s32.totalorder %v1038_v4, %v406_v17  ;;  %vm430_vm7 = vcmp.eq.s32.totalorder %v1033_v3, %v406_v17  ;;  %s403_s19 = sadd.s32 1, %s918_s19  }
 0x212   : >> { %v408_v18 = vsel %vm407_vm4, 1, %v927_v16  ;;  %p402_p9 = scmp.ge.s32.totalorder %s403_s19, %s399_s20 }
 0x213   : >> { %410 = vperm.xlu0 %745, %v408_v18  }
 0x292   : >> { %v411_v19 = vpop.permute.xlu0 %410 }
 0x293   : >> { %vm412_vm6 = vcmp.eq.s32.totalorder %v411_v19, 1 }
 0x294   : >> { %v413_v20 = vsel %vm412_vm6, %v1044_v8, -inf  ;;  %v422_v21 = vsel %vm412_vm6, %v1044_v8, inf }
 0x295   : >> { %v415_v22 = vsel %vm414_vm5, %v413_v20, -inf  ;;  %v423_v23 = vsel %vm414_vm5, %v422_v21, inf }
 0x296   : >> { %v416_v24 = vrot.slane %v415_v22, 4  ;;  %v424_v25 = vrot.slane %v423_v23, 4 }
 0x298   : >> { %v417_v26 = vmax.f32 %v415_v22, %v416_v24  ;;  %v425_v27 = vmin.f32 %v423_v23, %v424_v25 }
 0x29a   : >> { %v418_v28 = vrot.slane %v417_v26, 2  ;;  %v426_v29 = vrot.slane %v425_v27, 2 }
 0x29c   : >> { %v419_v30 = vmax.f32 %v417_v26, %v418_v28  ;;  %v427_v31 = vmin.f32 %v425_v27, %v426_v29 }
 0x29e   : >> { %v420_v32 = vrot.slane %v419_v30, 1  ;;  %v428_v33 = vrot.slane %v427_v31, 1 }
 0x29f   : > { %405 = sbr.rel (!%p402_p9) target bundleno = 528 (0x210), region = 109 }
 0x2a0   : >> { %v421_v36 = vmax.f32 %v419_v30, %v420_v32  ;;  %v429_v37 = vmin.f32 %v427_v31, %v428_v33 }
 0x2a2   : >> { %v434_v38 = vsel %vm430_vm7, %v421_v36, -inf  ;;  %v438_v39 = vsel %vm430_vm7, %v429_v37, inf }
 0x2a3   : >> { %v435_v40 = vmax.f32 %v431_v34, %v434_v38  ;;  %v439_v41 = vmin.f32 %v437_v35, %v438_v39 }
 0x2a5   : >> { %436 = vst.msk [vmem:[%s1054_s0] sm:$0x3] %vm271_vm2, %v435_v40  ;;  %440 = vst.msk [vmem:[%s1058_s14] sm:$0x3] %vm271_vm2, %v439_v41 }
 0x2a6 PF: > { %s1095_s21 = sand.u32 1, %s636_s11   ;;  %s1098_s22 = sshll.u32 %s906_s8, 5 }
 0x2a7   : > { %s1104_s25 = scalar_lea.hbm %s1221_s5, %s1098_s22  ;;  %s478_s26 = sshll.u32 %s1054_s0, 4  ;;  %s1107_s26 = int_to_ptr.vmem [resolvable:$true] %s478_s26 }
 0x2a8   : > { %s1113_s11 = scalar_lea.hbm %s1220_s4, %s1098_s22  ;;  %s447_s8 = scalar_lea.sflag [#allocation8], %s1095_s21 }
 0x2a9   : > { %s770_s19 = scalar_lea.vmem %s1107_s26, 32  ;;  %s928_s20 = smov [#allocation7]  }
 0x2aa   : > { %p771_p10 = scmp.ne.s32.totalorder %s1107_s26, %s770_s19  ;;  %s774_s23 = sshll.u32 %s928_s20, 4  ;;  %s775_s23 = int_to_ptr.vmem [resolvable:$false] %s774_s23 }
 0x2ab   : > { %s776_s0 = scalar_lea.vmem %s775_s23, 64  ;;  %p777_p13 = scmp.lt.s32.totalorder %s1107_s26, %s775_s23 }
 0x2ac   : > { %p772_p11 = pnand %p771_p10, %p1014_p0  ;;  %p778_p1 = scmp.lt.s32.totalorder %s776_s0, %s770_s19 }
 0x2ae   : > { %p773_p12 = pneg %p772_p11  ;;  %p779_p2 = por %p778_p1, %p777_p13 }
 0x2b0   : > { %p780_p3 = pnand %p779_p2, %p773_p12 }
 0x2b2   : > { %783 = shalt.err (!%p780_p3)
}
 0x2b3   : > { %s784_s24 = scalar_lea.hbm %s1104_s25, 32  ;;  %s788_s20 = scalar_lea.hbm %s1221_s5, 64 }
 0x2b4   : > { %p785_p5 = scmp.ne.s32.totalorder %s1104_s25, %s784_s24  ;;  %p789_p8 = scmp.lt.u32.totalorder %s1104_s25, %s1221_s5 }
 0x2b5   : > { %p790_p9 = scmp.lt.u32.totalorder %s788_s20, %s784_s24  ;;  %p792_p11 = scmp.lt.u32.totalorder %s784_s24, %s1104_s25 }
 0x2b6   : > { %p786_p6 = pnand %p785_p5, %p1014_p0 }
 0x2b7   : > { %p791_p10 = por %p790_p9, %p789_p8 }
 0x2b8   : > { %p787_p7 = pneg %p786_p6 }
 0x2b9   : > { %p793_p12 = por %p792_p11, %p791_p10 }
 0x2bb   : > { %p794_p13 = pnand %p793_p12, %p787_p7 }
 0x2bd   : > { %797 = shalt.err (!%p794_p13)
}
 0x2be   : > { %664 = dma.vmem_to_hbm [thread:$0]  (%p1014_p0), %s1107_s26, 32, %s1104_s25, %s447_s8  }
 0x2bf   : > { %s465_s12 = sshll.u32 %s1050_s29, 4  ;;  %s1144_s24 = scalar_lea.hbm %s1222_s6, %s1098_s22  ;;  %s1146_s12 = int_to_ptr.vmem [resolvable:$true] %s465_s12 }
 0x2c0   : > { %s491_s28 = sshll.u32 %s1058_s14, 4  ;;  %s442_s16 = scalar_lea.sflag [#allocation6], %s237_s27  ;;  %s492_s28 = int_to_ptr.vmem [resolvable:$true] %s491_s28 }
 0x2c1   : > { %s798_s20 = scalar_lea.vmem %s1146_s12, 32  ;;  %s929_s25 = smov [#allocation5]  }
 0x2c2   : > { %p799_p1 = scmp.ne.s32.totalorder %s1146_s12, %s798_s20  ;;  %s802_s29 = sshll.u32 %s929_s25, 4  ;;  %s803_s29 = int_to_ptr.vmem [resolvable:$false] %s802_s29 }
 0x2c3   : > { %s804_s26 = scalar_lea.vmem %s803_s29, 64  ;;  %p805_p5 = scmp.lt.s32.totalorder %s1146_s12, %s803_s29 }
 0x2c4   : > { %p800_p2 = pnand %p799_p1, %p1014_p0  ;;  %p806_p6 = scmp.lt.s32.totalorder %s804_s26, %s798_s20 }
 0x2c6   : > { %p801_p3 = pneg %p800_p2  ;;  %p807_p7 = por %p806_p6, %p805_p5 }
 0x2c8   : > { %p808_p8 = pnand %p807_p7, %p801_p3 }
 0x2ca   : > { %811 = shalt.err (!%p808_p8)
}
 0x2cb   : > { %s812_s27 = scalar_lea.hbm %s1113_s11, 32  ;;  %s816_s19 = scalar_lea.hbm %s1220_s4, 64 }
 0x2cc   : > { %p813_p9 = scmp.ne.s32.totalorder %s1113_s11, %s812_s27  ;;  %p817_p12 = scmp.lt.u32.totalorder %s1113_s11, %s1220_s4 }
 0x2cd   : > { %p818_p13 = scmp.lt.u32.totalorder %s816_s19, %s812_s27  ;;  %p820_p2 = scmp.lt.u32.totalorder %s812_s27, %s1113_s11 }
 0x2ce   : > { %p814_p10 = pnand %p813_p9, %p1014_p0 }
 0x2cf   : > { %p819_p1 = por %p818_p13, %p817_p12 }
 0x2d0   : > { %p815_p11 = pneg %p814_p10 }
 0x2d1   : > { %p821_p3 = por %p820_p2, %p819_p1 }
 0x2d3   : > { %p822_p5 = pnand %p821_p3, %p815_p11 }
 0x2d5   : > { %825 = shalt.err (!%p822_p5)
}
 0x2d6   : > { %663 = dma.vmem_to_hbm [thread:$0]  (%p1014_p0), %s1146_s12, 32, %s1113_s11, %s442_s16  }
 0x2d7   : > { %s826_s20 = scalar_lea.vmem %s492_s28, 32  ;;  %s930_s29 = smov [#allocation9]  }
 0x2d8   : > { %p827_p6 = scmp.ne.s32.totalorder %s492_s28, %s826_s20  ;;  %s830_s26 = sshll.u32 %s930_s29, 4  ;;  %s831_s26 = int_to_ptr.vmem [resolvable:$false] %s830_s26 }
 0x2d9   : > { %s832_s27 = scalar_lea.vmem %s831_s26, 64  ;;  %p833_p9 = scmp.lt.s32.totalorder %s492_s28, %s831_s26 }
 0x2da   : > { %p828_p7 = pnand %p827_p6, %p1014_p0  ;;  %p834_p10 = scmp.lt.s32.totalorder %s832_s27, %s826_s20 }
 0x2dc   : > { %p829_p8 = pneg %p828_p7  ;;  %p835_p11 = por %p834_p10, %p833_p9 }
 0x2de   : > { %p836_p12 = pnand %p835_p11, %p829_p8 }
 0x2e0   : > { %839 = shalt.err (!%p836_p12)
}
 0x2e1   : > { %s840_s14 = scalar_lea.hbm %s1144_s24, 32  ;;  %s844_s16 = scalar_lea.hbm %s1222_s6, 64 }
 0x2e2   : > { %p841_p13 = scmp.ne.s32.totalorder %s1144_s24, %s840_s14  ;;  %p845_p3 = scmp.lt.u32.totalorder %s1144_s24, %s1222_s6 }
 0x2e3   : > { %p846_p5 = scmp.lt.u32.totalorder %s844_s16, %s840_s14  ;;  %p848_p7 = scmp.lt.u32.totalorder %s840_s14, %s1144_s24 }
 0x2e4   : > { %p842_p1 = pnand %p841_p13, %p1014_p0 }
 0x2e5   : > { %p847_p6 = por %p846_p5, %p845_p3 }
 0x2e6   : > { %p843_p2 = pneg %p842_p1 }
 0x2e7   : > { %p849_p8 = por %p848_p7, %p847_p6 }
 0x2e9   : > { %p850_p9 = pnand %p849_p8, %p843_p2 }
 0x2eb   : > { %853 = shalt.err (!%p850_p9)
}
 0x2ec   : > { %665 = dma.vmem_to_hbm [thread:$0]  (%p1014_p0), %s492_s28, 32, %s1144_s24, %s447_s8  }
 0x2ed PF: > { %p679_p10 = scmp.ge.s32.totalorder %s914_s10, 2  ;;  %s503_s19 = sand.u32 1, %s894_s1  }
 0x2ee   : > { %s504_s0 = scalar_lea.sflag [#allocation6], %s503_s19 }
 0x2ef   : > { %p670_p11 = pnand %p679_p10, %p1023_p4 }
 0x2f1   : > { %885 = dma.done.wait (!%p670_p11), %s504_s0, 32  }
 0x2f2   : > { %887 = vsyncadd (!%p670_p11), %s504_s0, 4294967264  ;;  %s1227_s25 = sadd.s32 4294967294, %s914_s10  }
 0x2f3   : > { %s512_s20 = sand.u32 1, %s1227_s25  }
 0x2f4   : > { %s513_s29 = scalar_lea.sflag [#allocation8], %s512_s20 }
 0x2f5   : > { %889 = dma.done.wait (!%p670_p11), %s513_s29, 64  }
 0x2f6   : > { %891 = vsyncadd (!%p670_p11), %s513_s29, 4294967232  ;;  %s33_s10 = sadd.s32 1, %s914_s10   ;;  %s1228_s1 = smov %s898_s30 }
 0x2f7   : > { %p30_p0 = scmp.ge.s32.totalorder %s33_s10, 4   ;;  %s1229_s30 = smov %s902_s7 }
 0x2f8   : > { %s1230_s7 = smov %s1029_s18  ;;  %s1231_s8 = smov %s910_s9 }
 0x2f9   : > { %s1232_s9 = smov %s1234_s13  ;;  %32 = sbr.rel (!%p30_p0) target bundleno = 31 (0x1f), region = 120 }
 0x300   :  { %527 = vsyncpa [#allocation6], 1 }
 0x301   :  { %529 = vsyncpa [#allocation6 + $0x1], 1 }
 0x302   :  { %530 = vsyncpa [#allocation8], 1 }
 0x303   :  { %532 = vsyncpa [#allocation8 + $0x1], 1 }

</bundles_post_ra>
